<compile_context>
chip_gen: v7x
topology: tpu7x:2x2x1
jax: 0.10.0
libtpu: 0.0.40
codegen_flags: <defaults>
</compile_context>

<pallas_src>
import functools

import jax
import jax.numpy as jnp
from jax.experimental import pallas as pl
from jax.experimental.pallas import tpu as pltpu


def _round_up(x, m):
    return ((x + m - 1) // m) * m


def q_kernel(obs_ref, acts_ref,
             w_obs_ref, w_act_ref, b_e_ref,
             w1a_ref, w1b_ref, b1_ref,
             w2_ref, b2_ref,
             w3_ref, b3_ref,
             q_ref):
    # Per-tile cast to bf16 (rides VPU slack; avoids a separate XLA cast pass).
    obs_b = obs_ref[...].astype(jnp.bfloat16)
    acts_b = acts_ref[...].astype(jnp.bfloat16)

    # Fused embed: lanes 0:64 = obs_FC(obs), lanes 64:128 = action_FC(acts).
    # Two tiny-K MXU passes into one full-128-lane f32 value.
    embed = (jnp.dot(obs_b, w_obs_ref[...], preferred_element_type=jnp.float32)
             + jnp.dot(acts_b, w_act_ref[...], preferred_element_type=jnp.float32)
             + b_e_ref[...])

    # Half-rotation swaps the two 64-lane halves, so |embed - roll(embed, 64)|
    # holds |obs_e - act_e| (duplicated in both halves).  XLU op, ~free.
    diff = jnp.abs(embed - pltpu.roll(embed, shift=64, axis=1))

    embed_b = embed.astype(jnp.bfloat16)
    diff_b = diff.astype(jnp.bfloat16)

    # FC1 on the implicit concat [obs_e, act_e, |obs_e - act_e|]:
    #   dot(embed, w1[0:128]) + dot(diff, [w1[128:192]; 0]).
    # The zero block in w1b cancels the duplicated upper half of `diff`.
    h1 = (jnp.dot(embed_b, w1a_ref[...], preferred_element_type=jnp.float32)
          + jnp.dot(diff_b, w1b_ref[...], preferred_element_type=jnp.float32)
          + b1_ref[...])
    h1 = jnp.maximum(h1, 0.0).astype(jnp.bfloat16)

    # FC2 + relu (f32 elementwise).
    h2 = jnp.dot(h1, w2_ref[...], preferred_element_type=jnp.float32) + b2_ref[...]
    h2 = jnp.maximum(h2, 0.0)

    # FC3 (out dim = 1): VPU multiply + lane reduce instead of an N=1 MXU pass.
    q_ref[...] = jnp.sum(h2 * w3_ref[...], axis=-1, keepdims=True) + b3_ref[...]


def prepare_params(params):
    """One-time packing/casting of the raw (PyTorch-layout) parameters.

    Returns a pytree that should be cached by the caller and reused across
    q_forward calls (all HBM re-reads/re-writes of weights happen once here).
    """
    (w_obs, b_obs, w_act, b_act, w1, b1, w2, b2, w3, b3) = params
    f32, bf16 = jnp.float32, jnp.bfloat16
    dim_obs = w_obs.shape[0]
    dim_act = w_act.shape[0]

    # Block-diagonal embed weights -> embed comes out as one (tile_b, 128)
    # full-lane value with obs_e in lanes 0:64 and act_e in lanes 64:128.
    w_obs_p = jnp.concatenate(
        [w_obs, jnp.zeros((dim_obs, 64), f32)], axis=1).astype(bf16)   # (dim_obs, 128)
    w_act_p = jnp.concatenate(
        [jnp.zeros((dim_act, 64), f32), w_act], axis=1).astype(bf16)   # (dim_act, 128)
    b_e = jnp.concatenate([b_obs, b_act]).reshape(1, 128).astype(f32)

    # FC1 split: rows 0:128 act on [obs_e, act_e]; rows 128:192 act on the
    # abs-diff (padded with zeros so the duplicated diff half contributes 0).
    w1a = w1[:128, :].astype(bf16)                                     # (128, 128)
    w1b = jnp.concatenate(
        [w1[128:192, :], jnp.zeros((64, 128), f32)], axis=0).astype(bf16)  # (128, 128)
    b1_r = b1.reshape(1, -1).astype(f32)

    w2_b = w2.astype(bf16)                                             # (128, 64)
    b2_r = b2.reshape(1, -1).astype(f32)
    w3_row = w3.reshape(1, -1).astype(f32)                             # (1, 64) VPU path
    b3_r = b3.reshape(1, 1).astype(f32)

    return (w_obs_p, w_act_p, b_e, w1a, w1b, b1_r, w2_b, b2_r, w3_row, b3_r)


def q_forward(obs, acts, prepared, *, tile_b=512):
    """Batch-tiled, pipelined Pallas forward pass of the IQL Q network.

    `prepared` is the output of prepare_params() (pre-cast / pre-packed).
    tile_b: sweep 512/1024 on v6e/v7x; keep ~256-512 on v5e (1 vst slot).
    """
    B, dim_obs = obs.shape
    dim_act = acts.shape[1]

    # Tile selection: prefer >= 2 grid steps so v7x's two TensorCores both get
    # work; keep tile_b a multiple of 8 (f32 sublane); a single full-batch
    # block (tile_b == B) is always a legal block shape.
    tile_b = min(tile_b, _round_up(max(pl.cdiv(B, 2), 1), 16))
    tile_b = max(8, _round_up(tile_b, 8))
    if tile_b >= B:
        tile_b = B
    grid = (pl.cdiv(B, tile_b),)

    inputs = (obs, acts) + tuple(prepared)

    def resident(a):
        # Constant block index across the grid -> stays resident in VMEM.
        return pl.BlockSpec(a.shape, lambda i: (0, 0))

    in_specs = [
        pl.BlockSpec((tile_b, dim_obs), lambda i: (i, 0)),
        pl.BlockSpec((tile_b, dim_act), lambda i: (i, 0)),
    ] + [resident(a) for a in prepared]

    out = pl.pallas_call(
        q_kernel,
        out_shape=jax.ShapeDtypeStruct((B, 1), jnp.float32),
        grid=grid,
        in_specs=in_specs,
        out_specs=pl.BlockSpec((tile_b, 1), lambda i: (i, 0)),
        compiler_params=pltpu.CompilerParams(
            dimension_semantics=("parallel",)),
    )(*inputs)

    return out


def init_params(key, dim_observation, dim_action):
    """Deterministic synthetic params (shapes match the PyTorch module)."""
    ks = jax.random.split(key, 10)

    def lin(kw, kb, d_in, d_out):
        scale = 1.0 / jnp.sqrt(jnp.float32(d_in))
        w = jax.random.uniform(kw, (d_in, d_out), jnp.float32, -scale, scale)
        b = jax.random.uniform(kb, (d_out,), jnp.float32, -scale, scale)
        return w, b

    w_obs, b_obs = lin(ks[0], ks[1], dim_observation, 64)
    w_act, b_act = lin(ks[2], ks[3], dim_action, 64)
    w1, b1 = lin(ks[4], ks[5], 64 * 3, 128)
    w2, b2 = lin(ks[6], ks[7], 128, 64)
    w3, b3 = lin(ks[8], ks[9], 64, 1)
    return (w_obs, b_obs, w_act, b_act, w1, b1, w2, b2, w3, b3)


def q_reference(obs, acts, params):
    """Pure-JAX f32 reference mirroring the PyTorch forward exactly."""
    (w_obs, b_obs, w_act, b_act, w1, b1, w2, b2, w3, b3) = params
    obs_e = obs @ w_obs + b_obs
    act_e = acts @ w_act + b_act
    diff = jnp.abs(obs_e - act_e)
    combined = jnp.concatenate([obs_e, act_e, diff], axis=-1)
    h1 = jnp.maximum(combined @ w1 + b1, 0.0)
    h2 = jnp.maximum(h1 @ w2 + b2, 0.0)
    return h2 @ w3 + b3


if __name__ == "__main__":
    dim_observation = 16
    dim_action = 8
    batch = 8

    key = jax.random.PRNGKey(0)
    k_obs, k_act, k_param = jax.random.split(key, 3)

    obs = jax.random.normal(k_obs, (batch, dim_observation), jnp.float32)
    acts = jax.random.normal(k_act, (batch, dim_action), jnp.float32)
    params = init_params(k_param, dim_observation, dim_action)

    # One-time param packing (cache this pytree in real use).
    prepared = prepare_params(params)
    prepared = jax.block_until_ready(prepared)

    q = q_forward(obs, acts, prepared)
    q = jax.block_until_ready(q)

    q_ref = q_reference(obs, acts, params)
    assert q.shape == (batch, 1)
    # bf16 matmul path vs f32 reference -> loosened tolerance.
    assert jnp.allclose(q, q_ref, atol=5e-2, rtol=5e-2), (
        f"max abs diff = {jnp.max(jnp.abs(q - q_ref))}")

    print("KERNEL_OK")
</pallas_src>

<mosaic_0001>
module attributes {stable_mosaic.version = 11 : i64} {
  func.func @q_kernel(%arg0: i32, %arg1: memref<8x16xf32, #tpu.memory_space<vmem>>, %arg2: memref<8x8xf32, #tpu.memory_space<vmem>>, %arg3: memref<16x128xbf16, #tpu.memory_space<vmem>>, %arg4: memref<8x128xbf16, #tpu.memory_space<vmem>>, %arg5: memref<1x128xf32, #tpu.memory_space<vmem>>, %arg6: memref<128x128xbf16, #tpu.memory_space<vmem>>, %arg7: memref<128x128xbf16, #tpu.memory_space<vmem>>, %arg8: memref<1x128xf32, #tpu.memory_space<vmem>>, %arg9: memref<128x64xbf16, #tpu.memory_space<vmem>>, %arg10: memref<1x64xf32, #tpu.memory_space<vmem>>, %arg11: memref<1x64xf32, #tpu.memory_space<vmem>>, %arg12: memref<1x1xf32, #tpu.memory_space<vmem>>, %arg13: memref<8x1xf32, #tpu.memory_space<vmem>>) attributes {dimension_semantics = [#tpu.dimension_semantics<parallel>], iteration_bounds = array<i64: 1>, scalar_prefetch = 0 : i64, scratch_operands = 0 : i64, tpu.core_type = #tpu.core_type<tc>, window_params = [{transform_indices = @transform_0, window_bounds = array<i64: 8, 16>}, {transform_indices = @transform_1, window_bounds = array<i64: 8, 8>}, {pipeline_mode = #tpu.pipeline_mode<synchronous>, transform_indices = @transform_2, window_bounds = array<i64: 16, 128>}, {pipeline_mode = #tpu.pipeline_mode<synchronous>, transform_indices = @transform_3, window_bounds = array<i64: 8, 128>}, {pipeline_mode = #tpu.pipeline_mode<synchronous>, transform_indices = @transform_4, window_bounds = array<i64: 1, 128>}, {pipeline_mode = #tpu.pipeline_mode<synchronous>, transform_indices = @transform_5, window_bounds = array<i64: 128, 128>}, {pipeline_mode = #tpu.pipeline_mode<synchronous>, transform_indices = @transform_6, window_bounds = array<i64: 128, 128>}, {pipeline_mode = #tpu.pipeline_mode<synchronous>, transform_indices = @transform_7, window_bounds = array<i64: 1, 128>}, {pipeline_mode = #tpu.pipeline_mode<synchronous>, transform_indices = @transform_8, window_bounds = array<i64: 128, 64>}, {pipeline_mode = #tpu.pipeline_mode<synchronous>, transform_indices = @transform_9, window_bounds = array<i64: 1, 64>}, {pipeline_mode = #tpu.pipeline_mode<synchronous>, transform_indices = @transform_10, window_bounds = array<i64: 1, 64>}, {pipeline_mode = #tpu.pipeline_mode<synchronous>, transform_indices = @transform_11, window_bounds = array<i64: 1, 1>}, {transform_indices = @transform_12, window_bounds = array<i64: 8, 1>}]} {
    %c0 = arith.constant 0 : index
    %c0_0 = arith.constant 0 : index
    %0 = vector.load %arg1[%c0, %c0_0] : memref<8x16xf32, #tpu.memory_space<vmem>>, vector<8x16xf32>
    %1 = arith.truncf %0 : vector<8x16xf32> to vector<8x16xbf16>
    %c0_1 = arith.constant 0 : index
    %c0_2 = arith.constant 0 : index
    %2 = vector.load %arg2[%c0_1, %c0_2] : memref<8x8xf32, #tpu.memory_space<vmem>>, vector<8x8xf32>
    %3 = arith.truncf %2 : vector<8x8xf32> to vector<8x8xbf16>
    %c0_3 = arith.constant 0 : index
    %c0_4 = arith.constant 0 : index
    %4 = vector.load %arg3[%c0_3, %c0_4] : memref<16x128xbf16, #tpu.memory_space<vmem>>, vector<16x128xbf16>
    %cst = arith.constant dense<0.000000e+00> : vector<8x128xf32>
    %5 = tpu.matmul %1, %4, %cst {dimension_numbers = #tpu.dot_dimension_numbers<[1], [0], [0], [1], [0, 0, 1, 1], [], []>} : vector<8x16xbf16>, vector<16x128xbf16>, vector<8x128xf32> -> vector<8x128xf32>
    %c0_5 = arith.constant 0 : index
    %c0_6 = arith.constant 0 : index
    %6 = vector.load %arg4[%c0_5, %c0_6] : memref<8x128xbf16, #tpu.memory_space<vmem>>, vector<8x128xbf16>
    %cst_7 = arith.constant dense<0.000000e+00> : vector<8x128xf32>
    %7 = tpu.matmul %3, %6, %cst_7 {dimension_numbers = #tpu.dot_dimension_numbers<[1], [0], [0], [1], [0, 0, 1, 1], [], []>} : vector<8x8xbf16>, vector<8x128xbf16>, vector<8x128xf32> -> vector<8x128xf32>
    %8 = arith.addf %5, %7 : vector<8x128xf32>
    %c0_8 = arith.constant 0 : index
    %c0_9 = arith.constant 0 : index
    %9 = vector.load %arg5[%c0_8, %c0_9] : memref<1x128xf32, #tpu.memory_space<vmem>>, vector<1x128xf32>
    %10 = vector.broadcast %9 : vector<1x128xf32> to vector<8x128xf32>
    %11 = arith.addf %8, %10 : vector<8x128xf32>
    %c64_i32 = arith.constant 64 : i32
    %12 = tpu.dynamic_rotate %11 by %c64_i32 dim 1 : vector<8x128xf32>, i32 -> vector<8x128xf32>
    %13 = arith.subf %11, %12 : vector<8x128xf32>
    %14 = math.absf %13 : vector<8x128xf32>
    %15 = arith.truncf %11 : vector<8x128xf32> to vector<8x128xbf16>
    %16 = arith.truncf %14 : vector<8x128xf32> to vector<8x128xbf16>
    %c0_10 = arith.constant 0 : index
    %c0_11 = arith.constant 0 : index
    %17 = vector.load %arg6[%c0_10, %c0_11] : memref<128x128xbf16, #tpu.memory_space<vmem>>, vector<128x128xbf16>
    %cst_12 = arith.constant dense<0.000000e+00> : vector<8x128xf32>
    %18 = tpu.matmul %15, %17, %cst_12 {dimension_numbers = #tpu.dot_dimension_numbers<[1], [0], [0], [1], [0, 0, 1, 1], [], []>} : vector<8x128xbf16>, vector<128x128xbf16>, vector<8x128xf32> -> vector<8x128xf32>
    %c0_13 = arith.constant 0 : index
    %c0_14 = arith.constant 0 : index
    %19 = vector.load %arg7[%c0_13, %c0_14] : memref<128x128xbf16, #tpu.memory_space<vmem>>, vector<128x128xbf16>
    %cst_15 = arith.constant dense<0.000000e+00> : vector<8x128xf32>
    %20 = tpu.matmul %16, %19, %cst_15 {dimension_numbers = #tpu.dot_dimension_numbers<[1], [0], [0], [1], [0, 0, 1, 1], [], []>} : vector<8x128xbf16>, vector<128x128xbf16>, vector<8x128xf32> -> vector<8x128xf32>
    %21 = arith.addf %18, %20 : vector<8x128xf32>
    %c0_16 = arith.constant 0 : index
    %c0_17 = arith.constant 0 : index
    %22 = vector.load %arg8[%c0_16, %c0_17] : memref<1x128xf32, #tpu.memory_space<vmem>>, vector<1x128xf32>
    %23 = vector.broadcast %22 : vector<1x128xf32> to vector<8x128xf32>
    %24 = arith.addf %21, %23 : vector<8x128xf32>
    %cst_18 = arith.constant 0.000000e+00 : f32
    %25 = vector.broadcast %cst_18 : f32 to vector<8x128xf32>
    %26 = arith.maximumf %24, %25 : vector<8x128xf32>
    %27 = arith.truncf %26 : vector<8x128xf32> to vector<8x128xbf16>
    %c0_19 = arith.constant 0 : index
    %c0_20 = arith.constant 0 : index
    %28 = vector.load %arg9[%c0_19, %c0_20] : memref<128x64xbf16, #tpu.memory_space<vmem>>, vector<128x64xbf16>
    %cst_21 = arith.constant dense<0.000000e+00> : vector<8x64xf32>
    %29 = tpu.matmul %27, %28, %cst_21 {dimension_numbers = #tpu.dot_dimension_numbers<[1], [0], [0], [1], [0, 0, 1, 1], [], []>} : vector<8x128xbf16>, vector<128x64xbf16>, vector<8x64xf32> -> vector<8x64xf32>
    %c0_22 = arith.constant 0 : index
    %c0_23 = arith.constant 0 : index
    %30 = vector.load %arg10[%c0_22, %c0_23] : memref<1x64xf32, #tpu.memory_space<vmem>>, vector<1x64xf32>
    %31 = vector.broadcast %30 : vector<1x64xf32> to vector<8x64xf32>
    %32 = arith.addf %29, %31 : vector<8x64xf32>
    %cst_24 = arith.constant 0.000000e+00 : f32
    %33 = vector.broadcast %cst_24 : f32 to vector<8x64xf32>
    %34 = arith.maximumf %32, %33 : vector<8x64xf32>
    %c0_25 = arith.constant 0 : index
    %c0_26 = arith.constant 0 : index
    %35 = vector.load %arg11[%c0_25, %c0_26] : memref<1x64xf32, #tpu.memory_space<vmem>>, vector<1x64xf32>
    %36 = vector.broadcast %35 : vector<1x64xf32> to vector<8x64xf32>
    %37 = arith.mulf %34, %36 : vector<8x64xf32>
    %cst_27 = arith.constant dense<0.000000e+00> : vector<8xf32>
    %38 = vector.multi_reduction <add>, %37, %cst_27 [1] : vector<8x64xf32> to vector<8xf32>
    %39 = vector.shape_cast %38 : vector<8xf32> to vector<8x1xf32>
    %c0_28 = arith.constant 0 : index
    %c0_29 = arith.constant 0 : index
    %40 = vector.load %arg12[%c0_28, %c0_29] : memref<1x1xf32, #tpu.memory_space<vmem>>, vector<1x1xf32>
    %41 = vector.broadcast %40 : vector<1x1xf32> to vector<8x1xf32>
    %42 = arith.addf %39, %41 : vector<8x1xf32>
    %c0_30 = arith.constant 0 : index
    %c0_31 = arith.constant 0 : index
    %43 = vector.load %arg13[%c0_30, %c0_31] : memref<8x1xf32, #tpu.memory_space<vmem>>, vector<8x1xf32>
    tpu.vector_store %arg13[%c0_30, %c0_31], %42 {strides = array<i32>} : memref<8x1xf32, #tpu.memory_space<vmem>>, vector<8x1xf32>,
    return
  }
  func.func @transform_0(%arg0: i32) -> (i32, i32) {
    %c0_i32 = arith.constant 0 : i32
    %c0_i32_0 = arith.constant 0 : i32
    return %arg0, %c0_i32 : i32, i32
  }
  func.func @transform_1(%arg0: i32) -> (i32, i32) {
    %c0_i32 = arith.constant 0 : i32
    %c0_i32_0 = arith.constant 0 : i32
    return %arg0, %c0_i32 : i32, i32
  }
  func.func @transform_2(%arg0: i32) -> (i32, i32) {
    %c0_i32 = arith.constant 0 : i32
    %c0_i32_0 = arith.constant 0 : i32
    %c0_i32_1 = arith.constant 0 : i32
    return %c0_i32, %c0_i32_0 : i32, i32
  }
  func.func @transform_3(%arg0: i32) -> (i32, i32) {
    %c0_i32 = arith.constant 0 : i32
    %c0_i32_0 = arith.constant 0 : i32
    %c0_i32_1 = arith.constant 0 : i32
    return %c0_i32, %c0_i32_0 : i32, i32
  }
  func.func @transform_4(%arg0: i32) -> (i32, i32) {
    %c0_i32 = arith.constant 0 : i32
    %c0_i32_0 = arith.constant 0 : i32
    %c0_i32_1 = arith.constant 0 : i32
    return %c0_i32, %c0_i32_0 : i32, i32
  }
  func.func @transform_5(%arg0: i32) -> (i32, i32) {
    %c0_i32 = arith.constant 0 : i32
    %c0_i32_0 = arith.constant 0 : i32
    %c0_i32_1 = arith.constant 0 : i32
    return %c0_i32, %c0_i32_0 : i32, i32
  }
  func.func @transform_6(%arg0: i32) -> (i32, i32) {
    %c0_i32 = arith.constant 0 : i32
    %c0_i32_0 = arith.constant 0 : i32
    %c0_i32_1 = arith.constant 0 : i32
    return %c0_i32, %c0_i32_0 : i32, i32
  }
  func.func @transform_7(%arg0: i32) -> (i32, i32) {
    %c0_i32 = arith.constant 0 : i32
    %c0_i32_0 = arith.constant 0 : i32
    %c0_i32_1 = arith.constant 0 : i32
    return %c0_i32, %c0_i32_0 : i32, i32
  }
  func.func @transform_8(%arg0: i32) -> (i32, i32) {
    %c0_i32 = arith.constant 0 : i32
    %c0_i32_0 = arith.constant 0 : i32
    %c0_i32_1 = arith.constant 0 : i32
    return %c0_i32, %c0_i32_0 : i32, i32
  }
  func.func @transform_9(%arg0: i32) -> (i32, i32) {
    %c0_i32 = arith.constant 0 : i32
    %c0_i32_0 = arith.constant 0 : i32
    %c0_i32_1 = arith.constant 0 : i32
    return %c0_i32, %c0_i32_0 : i32, i32
  }
  func.func @transform_10(%arg0: i32) -> (i32, i32) {
    %c0_i32 = arith.constant 0 : i32
    %c0_i32_0 = arith.constant 0 : i32
    %c0_i32_1 = arith.constant 0 : i32
    return %c0_i32, %c0_i32_0 : i32, i32
  }
  func.func @transform_11(%arg0: i32) -> (i32, i32) {
    %c0_i32 = arith.constant 0 : i32
    %c0_i32_0 = arith.constant 0 : i32
    %c0_i32_1 = arith.constant 0 : i32
    return %c0_i32, %c0_i32_0 : i32, i32
  }
  func.func @transform_12(%arg0: i32) -> (i32, i32) {
    %c0_i32 = arith.constant 0 : i32
    %c0_i32_0 = arith.constant 0 : i32
    return %arg0, %c0_i32 : i32, i32
  }
}

</mosaic_0001>

<bundles_post_ra>
// kernel: tpu_custom_call.1
= control target key start
LH: loop header
LB: loop body
LE: loop exit
PB: predicated region body
PF: predicated region fallthrough
CT: control target
= control target key end

     0   :  { %s922_s0 = inlined_call_operand.vmem [shape: f32[8,16], index: 0, kind: input, shape index: {}]   ;;  %s923_s1 = inlined_call_operand.vmem [shape: f32[8,8], index: 1, kind: input, shape index: {}]   ;;  %s924_s2 = inlined_call_operand.vmem [shape: bf16[16,128], index: 2, kind: input, shape index: {}]   ;;  %s925_s3 = inlined_call_operand.vmem [shape: bf16[8,128], index: 3, kind: input, shape index: {}]   ;;  %s926_s4 = inlined_call_operand.vmem [shape: f32[1,128], index: 4, kind: input, shape index: {}]   ;;  %s927_s5 = inlined_call_operand.vmem [shape: bf16[128,128], index: 5, kind: input, shape index: {}]   ;;  %s928_s6 = inlined_call_operand.hbm [shape: bf16[128,128], index: 6, kind: input, shape index: {}]   ;;  %s929_s7 = inlined_call_operand.vmem [shape: f32[1,128], index: 7, kind: input, shape index: {}]   ;;  %s930_s8 = inlined_call_operand.vmem [shape: bf16[128,64], index: 8, kind: input, shape index: {}]   ;;  %s931_s9 = inlined_call_operand.vmem [shape: f32[1,64], index: 9, kind: input, shape index: {}]   ;;  %s932_s10 = inlined_call_operand.vmem [shape: f32[1,64], index: 10, kind: input, shape index: {}]   ;;  %s933_s11 = inlined_call_operand.<no memory space> [shape: f32[1,1], index: 11, kind: input, shape index: {}]   ;;  %s934_s12 = inlined_call_operand.vmem [shape: f32[8,1], index: 12, kind: output, shape index: {}]  }
   0x1   :  { %v17_v0 = vstv %s933_s11 }
   0x2   :  { %18 = vst [vmem:[#allocation2] sm:$0x1] %v17_v0 }
   0x3   :  { %19 = vsyncpa [#allocation4], 0  ;;  %s723_s23 = smov [#allocation3]   ;;  %s699_s27 = scalar_lea.hbm %s928_s6, 1024 }
   0x4   :  { %s37_s24 = sshll.u32 %s723_s23, 4  ;;  %p700_p0 = scmp.ne.s32.totalorder %s928_s6, %s699_s27  ;;  %s38_s24 = int_to_ptr.vmem [resolvable:$true] %s37_s24 }
   0x5   :  { %p703_p1 = scmp.lt.u32.totalorder %s699_s27, %s928_s6 }
   0x7   :  { %p705_p2 = pnand %p703_p1, %p700_p0 }
   0x9   :  { %708 = shalt.err (!%p705_p2)
}
   0xa   :  { %s709_s11 = scalar_lea.vmem %s38_s24, 1024  ;;  %p714_p4 = scmp.lt.s32.totalorder %s38_s24, %s38_s24 }
   0xb   :  { %p710_p3 = scmp.ne.s32.totalorder %s38_s24, %s709_s11  ;;  %p715_p5 = scmp.lt.s32.totalorder %s709_s11, %s709_s11 }
   0xd   :  { %p716_p6 = por %p715_p5, %p714_p4 }
   0xf   :  { %p717_p7 = pnand %p716_p6, %p710_p3 }
  0x11   :  { %720 = shalt.err (!%p717_p7)
}
  0x12   :  { %s724_s14 = smov 64   ;;  %s725_s15 = smov 4  }
  0x13   :  { %43 = dma.hbm_to_vmem [thread:$0]  %s928_s6, 1024, %s38_s24, [#allocation4], %s724_s14, %s724_s14, %s725_s15  }
  0x14   :  { %721 = dma.done.wait [#allocation4], 1024  }
  0x15   :  { %722 = vsyncadd [#allocation4], 4294966272  ;;  %v726_v1 = vmov 0.0   ;;  %vm727_vm0 = vmmov 0   ;;  %vm69_vm1 = vcmask 1043456   ;;  %v60_v3 = vld [vmem:[%s923_s1] sm:$0xff] }
  0x16   :  { %597 = vmatprep.subr.bf16.mxu1 %v726_v1  ;;  %599 = vmatprep.mubr.msk.bf16.mxu1 %vm727_vm0, %v726_v1  ;;  %v64_v2 = vld [vmem:[%s925_s3] sm:$0xf]  ;;  %v61_v5 = vpack.c.bf16 %v60_v3, %v60_v3  ;;  %vm65_vm2 = vcmask 64512   ;;  %vm119_vm3 = vcmask 130048   ;;  %v676_v10 = vld [vmem:[%s927_s5 + $0x8] sm:$0xff]   ;;  %v677_v11 = vld [vmem:[%s927_s5 + $0x10] sm:$0xff]  }
  0x17   :  { %609 = vmatprep.subr.bf16.mxu0 %v726_v1  ;;  %625 = vmatprep.mubr.msk.bf16.mxu0 %vm727_vm0, %v726_v1  ;;  %v71_v4 = vsel %vm69_vm1, %v64_v2, 0  ;;  %v674_v6 = vld [vmem:[%s924_s2] sm:$0xff]   ;;  %v678_v12 = vld [vmem:[%s927_s5 + $0x18] sm:$0xff]   ;;  %v680_v14 = vld [vmem:[%s927_s5 + $0x28] sm:$0xff]   ;;  %vm515_vm4 = vcmask 523264   ;;  %vm527_vm5 = vcmask 7168  }
  0x18   :  { %598 = vmatpush3.bf16.msra.mxu1 %v71_v4  ;;  %v58_v7 = vld [vmem:[%s922_s0] sm:$0xff]  ;;  %v681_v15 = vld [vmem:[%s927_s5 + $0x30] sm:$0xff]   ;;  %v682_v16 = vld [vmem:[%s927_s5 + $0x38] sm:$0xff]  }
  0x19   :  { %603 = vmatprep.subr.bf16.mxu1 %v726_v1  ;;  %v675_v8 = vld [vmem:[%s927_s5] sm:$0xff]   ;;  %v59_v9 = vpack.c.bf16 %v58_v7, %v58_v7  ;;  %v684_v18 = vld [vmem:[#allocation3 + $0x8] sm:$0xff]   ;;  %v685_v19 = vld [vmem:[#allocation3 + $0x10] sm:$0xff]  }
  0x1a   :  { %v679_v13 = vld [vmem:[%s927_s5 + $0x20] sm:$0xff]   ;;  %v688_v22 = vld [vmem:[#allocation3 + $0x28] sm:$0xff]   ;;  %v689_v23 = vld [vmem:[#allocation3 + $0x30] sm:$0xff]  }
  0x1b   :  { %600 = vmatmul.mubr.msk.bf16.vlgmr.msra.gmra.mrb[0].mxu1 %vm65_vm2, %v61_v5  ;;  %v683_v17 = vld [vmem:[#allocation3] sm:$0xff]   ;;  %v686_v20 = vld [vmem:[#allocation3 + $0x18] sm:$0xff]   ;;  %v693_v43 = vld [vmem:[%s930_s8 + $0x10] sm:$0xff]  }
  0x1c   :  { %604 = vmatpush3.bf16.msra.mxu1 %v674_v6  ;;  %605 = vmatprep.mubr.msk.bf16.mxu1 %vm727_vm0, %v726_v1  ;;  %v687_v21 = vld [vmem:[#allocation3 + $0x20] sm:$0xff]   ;;  %v690_v26 = vld [vmem:[#allocation3 + $0x38] sm:$0xff]   ;;  %v697_v47 = vld [vmem:[%s930_s8 + $0x30] sm:$0xff]  }
  0x1d   :  { %629 = vmatprep.subr.bf16.mxu1 %v726_v1  ;;  %610 = vmatpush3.bf16.msra.mxu0 %v683_v17  ;;  %v537_v30 = vld [vmem:[%s926_s4] ss:$0 sm:$0xff]  ;;  %v692_v42 = vld [vmem:[%s930_s8 + $0x8] sm:$0xff]   ;;  %v694_v44 = vld [vmem:[%s930_s8 + $0x18] sm:$0xff]  }
  0x1e   :  { %611 = vmatprep.subr.bf16.mxu0 %v726_v1  ;;  %v691_v40 = vld [vmem:[%s930_s8] sm:$0xff]   ;;  %v696_v46 = vld [vmem:[%s930_s8 + $0x28] sm:$0xff]   ;;  %v698_v48 = vld [vmem:[%s930_s8 + $0x38] sm:$0xff]  }
  0x1f   :  { %v695_v45 = vld [vmem:[%s930_s8 + $0x20] sm:$0xff]  }
  0x20   :  { %v554_v54 = vld [vmem:[%s929_s7] ss:$0 sm:$0xff] }
  0x21   :  { %612 = vmatpush3.bf16.msra.mxu0 %v684_v18  ;;  %v555_v62 = vld [vmem:[%s931_s9] ss:$0 sm:$0xff] }
  0x22   :  { %613 = vmatprep.subr.bf16.mxu0 %v726_v1  ;;  %v564_v3 = vld [vmem:[%s932_s10] ss:$0 sm:$0xff] }
  0x23   :  { %606 = vmatmul.mubr.msk.bf16.vlgmr.msra.gmra.mrb[4].mxu1 %vm119_vm3, %v59_v9 }
  0x24   :  { %630 = vmatpush3.bf16.msra.mxu1 %v675_v8  ;;  %645 = vmatprep.mubr.msk.bf16.mxu1 %vm727_vm0, %v726_v1  ;;  %v565_v8 = vld [vmem:[#allocation2] ss:$0 sm:$0xff] }
  0x25   :  { %631 = vmatprep.subr.bf16.mxu1 %v726_v1  ;;  %614 = vmatpush3.bf16.msra.mxu0 %v685_v19 }
  0x26   :  { %615 = vmatprep.subr.bf16.mxu0 %v726_v1 }
  0x28   :  { %632 = vmatpush3.bf16.msra.mxu1 %v676_v10 }
  0x29   :  { %633 = vmatprep.subr.bf16.mxu1 %v726_v1  ;;  %616 = vmatpush3.bf16.msra.mxu0 %v686_v20 }
  0x2a   :  { %617 = vmatprep.subr.bf16.mxu0 %v726_v1 }
  0x2c   :  { %634 = vmatpush3.bf16.msra.mxu1 %v677_v11 }
  0x2d   :  { %635 = vmatprep.subr.bf16.mxu1 %v726_v1  ;;  %618 = vmatpush3.bf16.msra.mxu0 %v687_v21 }
  0x2e   :  { %619 = vmatprep.subr.bf16.mxu0 %v726_v1 }
  0x30   :  { %636 = vmatpush3.bf16.msra.mxu1 %v678_v12 }
  0x31   :  { %637 = vmatprep.subr.bf16.mxu1 %v726_v1  ;;  %620 = vmatpush3.bf16.msra.mxu0 %v688_v22 }
  0x32   :  { %621 = vmatprep.subr.bf16.mxu0 %v726_v1 }
  0x34   :  { %638 = vmatpush3.bf16.msra.mxu1 %v679_v13 }
  0x35   :  { %639 = vmatprep.subr.bf16.mxu1 %v726_v1  ;;  %622 = vmatpush3.bf16.msra.mxu0 %v689_v23 }
  0x36   :  { %623 = vmatprep.subr.bf16.mxu0 %v726_v1 }
  0x38   :  { %640 = vmatpush3.bf16.msra.mxu1 %v680_v14 }
  0x39   :  { %641 = vmatprep.subr.bf16.mxu1 %v726_v1  ;;  %624 = vmatpush3.bf16.msra.mxu0 %v690_v26 }
  0x3a   :  { %649 = vmatprep.subr.bf16.mxu0 %v726_v1 }
  0x3c   :  { %642 = vmatpush3.bf16.msra.mxu1 %v681_v15 }
  0x3d   :  { %643 = vmatprep.subr.bf16.mxu1 %v726_v1 }
  0x40   :  { %644 = vmatpush3.bf16.msra.mxu1 %v682_v16 }
  0xee   :  { %v107_v24 = vpop.f32.mrb[0].mxu1 }
  0xef   :  { %v601_v25 = vpop.f32.mrb[1].mxu1 }
  0xf0   :  { %v110_v27 = vpop.f32.mrb[2].mxu1 }
  0xf1   :  { %v602_v28 = vpop.f32.mrb[3].mxu1 }
  0xf6   :  { %v157_v29 = vpop.f32.mrb[4].mxu1 }
  0xf7   :  { %v158_v31 = vadd.f32 %v157_v29, %v107_v24  ;;  %v607_v32 = vpop.f32.mrb[5].mxu1 }
  0xf8   :  { %v160_v33 = vpop.f32.mrb[6].mxu1 }
  0xf9   :  { %v170_v34 = vadd.f32 %v537_v30, %v158_v31  ;;  %v608_v35 = vpop.f32.mrb[7].mxu1 }
  0xfb   :  { %v175_v36 = vpack.c.bf16 %v170_v34, %v170_v34  ;;  %171 = vrot.lane.b32.xlu0 %v170_v34, %s724_s14 }
  0xfd   :  { %646 = vmatmul.mubr.bf16.vlgmr.msra.gmra.mrb[8].mxu1 %v175_v36 }
 0x16d   :  { %v172_v37 = vpop.permute.xlu0 %171 }
 0x16e   :  { %v173_v38 = vsub.f32 %v170_v34, %v172_v37 }
 0x170   :  { %v174_v39 = vand.u32 2147483647, %v173_v38 }
 0x172   :  { %v176_v41 = vpack.c.bf16 %v174_v39, %v174_v39 }
 0x174   :  { %626 = vmatmul.mubr.bf16.vlgmr.msra.gmra.mrb[0].mxu0 %v176_v41 }
 0x175   :  { %650 = vmatpush3.bf16.msra.mxu0 %v691_v40  ;;  %665 = vmatprep.mubr.msk.bf16.mxu0 %vm727_vm0, %v726_v1 }
 0x176   :  { %651 = vmatprep.subr.bf16.mxu0 %v726_v1 }
 0x179   :  { %652 = vmatpush3.bf16.msra.mxu0 %v692_v42 }
 0x17a   :  { %653 = vmatprep.subr.bf16.mxu0 %v726_v1 }
 0x17d   :  { %654 = vmatpush3.bf16.msra.mxu0 %v693_v43 }
 0x17e   :  { %655 = vmatprep.subr.bf16.mxu0 %v726_v1 }
 0x181   :  { %656 = vmatpush3.bf16.msra.mxu0 %v694_v44 }
 0x182   :  { %657 = vmatprep.subr.bf16.mxu0 %v726_v1 }
 0x185   :  { %658 = vmatpush3.bf16.msra.mxu0 %v695_v45 }
 0x186   :  { %659 = vmatprep.subr.bf16.mxu0 %v726_v1 }
 0x189   :  { %660 = vmatpush3.bf16.msra.mxu0 %v696_v46 }
 0x18a   :  { %661 = vmatprep.subr.bf16.mxu0 %v726_v1 }
 0x18d   :  { %662 = vmatpush3.bf16.msra.mxu0 %v697_v47 }
 0x18e   :  { %663 = vmatprep.subr.bf16.mxu0 %v726_v1 }
 0x191   :  { %664 = vmatpush3.bf16.msra.mxu0 %v698_v48 }
 0x1d0   :  { %v379_v49 = vpop.f32.mrb[8].mxu1 }
 0x1d1   :  { %v647_v50 = vpop.f32.mrb[9].mxu1 }
 0x1d2   :  { %v382_v51 = vpop.f32.mrb[10].mxu1 }
 0x1d3   :  { %v648_v52 = vpop.f32.mrb[11].mxu1 }
 0x247   :  { %v291_v53 = vpop.f32.mrb[0].mxu0 }
 0x248   :  { %v380_v55 = vadd.f32 %v379_v49, %v291_v53  ;;  %v627_v56 = vpop.f32.mrb[1].mxu0 }
 0x249   :  { %v294_v57 = vpop.f32.mrb[2].mxu0 }
 0x24a   :  { %v392_v58 = vadd.f32 %v554_v54, %v380_v55  ;;  %v628_v59 = vpop.f32.mrb[3].mxu0 }
 0x24c   :  { %v393_v60 = vmax.f32 %v392_v58, 0.0 }
 0x24e   :  { %v394_v61 = vpack.c.bf16 %v393_v60, %v393_v60 }
 0x250   :  { %666 = vmatmul.mubr.bf16.vlgmr.msra.gmra.mrb[4].mxu0 %v394_v61 }
 0x323   :  { %v500_v63 = vpop.f32.mrb[4].mxu0 }
 0x324   :  { %v501_v0 = vadd.f32 %v555_v62, %v500_v63  ;;  %v667_v1 = vpop.f32.mrb[5].mxu0 }
 0x325   :  { %v503_v2 = vpop.f32.mrb[6].mxu0 }
 0x326   :  { %v506_v4 = vmax.f32 %v501_v0, 0.0  ;;  %v668_v5 = vpop.f32.mrb[7].mxu0 }
 0x328   :  { %v514_v6 = vmul.f32 %v564_v3, %v506_v4 }
 0x32a   :  { %v516_v7 = vsel %vm515_vm4, %v514_v6, 0.0 }
 0x32b   :  { %517 = vadd.xlane.f32.xlu0 %v516_v7 }
 0x3b8   :  { %v518_v9 = vpop.xlane.xlu0 %517 }
 0x3b9   :  { %v526_v10 = vadd.f32 %v565_v8, %v518_v9 }
 0x3bb   :  { %528 = vst.msk [vmem:[%s934_s12] sm:$0xff] %vm527_vm5, %v526_v10 }
 0x3bc   :  { %533 = vsyncpa [#allocation4], 1 }

</bundles_post_ra>
